<compile_context>
chip_gen: v7x
topology: tpu7x:2x2x1
jax: 0.10.0
libtpu: 0.0.40
codegen_flags: <defaults>
</compile_context>

<pallas_src>
import functools

import jax
import jax.numpy as jnp
from jax.experimental import pallas as pl
from jax.experimental.pallas import tpu as pltpu


def _double_conv_kernel(x_ref, w1_ref, b1_ref, w2_ref, b2_ref, o_ref,
                        xpad_ref, midpad_ref, *, H, W, Cin, Cout):
    """Fused Conv3x3+ReLU -> Conv3x3+ReLU for one batch element.

    x_ref:      (1, H, W*Cin)             lane-dense input
    w1_ref:     (3, (W+2)*Cin,  W*Cout)   banded conv1 weights (one slab per dy)
    b1_ref:     (1, W*Cout)               bias tiled over W
    w2_ref:     (3, (W+2)*Cout, W*Cout)   banded conv2 weights
    b2_ref:     (1, W*Cout)
    o_ref:      (1, H, W*Cout)            lane-dense output
    xpad_ref:   VMEM (H+2, (W+2)*Cin)     zero-padded conv1 input
    midpad_ref: VMEM (H+2, (W+2)*Cout)    zero-padded intermediate activation
    """

    def conv3x3_relu(pad_ref, w_ref, b_ref):
        # 3 banded matmuls (one per kernel row dy); output is already packed as
        # (H, W*Cout) so the result can be stored lane-dense with no reshape.
        acc = jnp.dot(pad_ref[pl.ds(0, H), :], w_ref[0],
                      preferred_element_type=jnp.float32)
        acc = acc + jnp.dot(pad_ref[pl.ds(1, H), :], w_ref[1],
                            preferred_element_type=jnp.float32)
        acc = acc + jnp.dot(pad_ref[pl.ds(2, H), :], w_ref[2],
                            preferred_element_type=jnp.float32)
        return jnp.maximum(acc + b_ref[...], 0.0)            # (H, W*Cout) f32

    # Stage 1: SAME padding happens in VMEM (no jnp.pad / extra HBM traffic).
    xpad_ref[...] = jnp.zeros_like(xpad_ref)
    xpad_ref[pl.ds(1, H), pl.ds(Cin, W * Cin)] = x_ref[0].astype(jnp.float32)
    a1 = conv3x3_relu(xpad_ref, w1_ref, b1_ref)              # (H, W*Cout)

    # Stage 2: intermediate activation stays resident in VMEM (fused stages).
    midpad_ref[...] = jnp.zeros_like(midpad_ref)
    midpad_ref[pl.ds(1, H), pl.ds(Cout, W * Cout)] = a1
    a2 = conv3x3_relu(midpad_ref, w2_ref, b2_ref)            # (H, W*Cout)

    # Full-lane (W*Cout wide) store.
    o_ref[0] = a2.astype(o_ref.dtype)


def _banded_weights(w_hwio, W):
    """(3,3,cin,cout) HWIO -> (3, (W+2)*cin, W*cout) block-Toeplitz slabs.

    M[dy, (x+dx)*cin + ci, x*cout + co] = w[dy, dx, ci, co], so that
    (H, (W+2)*cin) @ M[dy], summed over dy, is the SAME-padded 3x3 conv with
    the output channels packed onto the lane axis.
    """
    kh, kw, cin, cout = w_hwio.shape
    r = jnp.arange(W + 2)[:, None]
    x = jnp.arange(W)[None, :]
    slabs = []
    for dy in range(kh):
        m = jnp.zeros((W + 2, cin, W, cout), w_hwio.dtype)
        for dx in range(kw):
            sel = (r == x + dx).astype(w_hwio.dtype)                 # (W+2, W)
            m = m + sel[:, None, :, None] * w_hwio[dy, dx][None, :, None, :]
        slabs.append(m.reshape((W + 2) * cin, W * cout))
    return jnp.stack(slabs, axis=0)


@jax.jit
def double_conv(x_nchw, params):
    """Forward pass equivalent to DoubleConv.forward (NCHW in, NCHW out)."""
    N, Cin, H, W = x_nchw.shape
    Cout = params["b1"].shape[0]

    # NCHW -> lane-dense (N, H, W*C). Glue only; the conv hot path is in Pallas.
    x2d = jnp.transpose(x_nchw, (0, 2, 3, 1)).reshape(N, H, W * Cin)

    w1 = _banded_weights(params["w1"], W)          # (3, (W+2)*Cin,  W*Cout)
    w2 = _banded_weights(params["w2"], W)          # (3, (W+2)*Cout, W*Cout)
    b1 = jnp.tile(params["b1"], W).reshape(1, W * Cout)
    b2 = jnp.tile(params["b2"], W).reshape(1, W * Cout)

    kernel = functools.partial(_double_conv_kernel, H=H, W=W, Cin=Cin, Cout=Cout)

    out = pl.pallas_call(
        kernel,
        out_shape=jax.ShapeDtypeStruct((N, H, W * Cout), x_nchw.dtype),
        grid_spec=pltpu.PrefetchScalarGridSpec(
            num_scalar_prefetch=0,
            grid=(N,),                                      # one batch element / step
            in_specs=[
                pl.BlockSpec((1, H, W * Cin), lambda n: (n, 0, 0)),
                pl.BlockSpec((3, (W + 2) * Cin, W * Cout), lambda n: (0, 0, 0)),
                pl.BlockSpec((1, W * Cout), lambda n: (0, 0)),
                pl.BlockSpec((3, (W + 2) * Cout, W * Cout), lambda n: (0, 0, 0)),
                pl.BlockSpec((1, W * Cout), lambda n: (0, 0)),
            ],
            out_specs=pl.BlockSpec((1, H, W * Cout), lambda n: (n, 0, 0)),
            scratch_shapes=[
                pltpu.VMEM((H + 2, (W + 2) * Cin), jnp.float32),
                pltpu.VMEM((H + 2, (W + 2) * Cout), jnp.float32),
            ],
        ),
        compiler_params=pltpu.CompilerParams(
            dimension_semantics=("parallel",),              # megacore over batch
        ),
    )(x2d, w1, b1, w2, b2)

    return jnp.transpose(out.reshape(N, H, W, Cout), (0, 3, 1, 2))


def init_double_conv(key, inchannels, outchannels):
    """Deterministic PyTorch-style (kaiming-uniform) init, weights in HWIO."""
    k1, k2, k3, k4 = jax.random.split(key, 4)
    bnd1 = 1.0 / (inchannels * 9) ** 0.5
    bnd2 = 1.0 / (outchannels * 9) ** 0.5
    return dict(
        w1=jax.random.uniform(k1, (3, 3, inchannels, outchannels), jnp.float32, -bnd1, bnd1),
        b1=jax.random.uniform(k2, (outchannels,), jnp.float32, -bnd1, bnd1),
        w2=jax.random.uniform(k3, (3, 3, outchannels, outchannels), jnp.float32, -bnd2, bnd2),
        b2=jax.random.uniform(k4, (outchannels,), jnp.float32, -bnd2, bnd2),
    )


def _ref_double_conv(x_nchw, params):
    """Pure-JAX reference (fp32 ground truth) for validation."""
    x = jnp.transpose(x_nchw, (0, 2, 3, 1))
    for w, b in ((params["w1"], params["b1"]), (params["w2"], params["b2"])):
        x = jax.lax.conv_general_dilated(
            x, w, window_strides=(1, 1), padding="SAME",
            dimension_numbers=("NHWC", "HWIO", "NHWC"),
            precision=jax.lax.Precision.HIGHEST,
        )
        x = jnp.maximum(x + b, 0.0)
    return jnp.transpose(x, (0, 3, 1, 2))


if __name__ == "__main__":
    key = jax.random.PRNGKey(0)
    kx, kp = jax.random.split(key)

    inchannels, outchannels = 4, 8
    x = jax.random.normal(kx, (2, inchannels, 16, 16), jnp.float32)   # NCHW, like PyTorch
    params = init_double_conv(kp, inchannels, outchannels)

    out = jax.block_until_ready(double_conv(x, params))
    ref = jax.block_until_ready(_ref_double_conv(x, params))

    assert out.shape == (2, outchannels, 16, 16)
    # DEFAULT MXU precision (bf16 operand passes, f32 accumulate) vs fp32 reference.
    assert jnp.allclose(out, ref, rtol=2e-2, atol=2e-2), float(jnp.max(jnp.abs(out - ref)))
    print("KERNEL_OK")
</pallas_src>

<mosaic_0001>
module attributes {stable_mosaic.version = 11 : i64} {
  func.func @_double_conv_kernel(%arg0: i32, %arg1: memref<1x16x64xf32, #tpu.memory_space<vmem>>, %arg2: memref<3x72x128xf32, #tpu.memory_space<vmem>>, %arg3: memref<1x128xf32, #tpu.memory_space<vmem>>, %arg4: memref<3x144x128xf32, #tpu.memory_space<vmem>>, %arg5: memref<1x128xf32, #tpu.memory_space<vmem>>, %arg6: memref<1x16x128xf32, #tpu.memory_space<vmem>>, %arg7: memref<18x72xf32, #tpu.memory_space<vmem>>, %arg8: memref<18x144xf32, #tpu.memory_space<vmem>>) attributes {dimension_semantics = [#tpu.dimension_semantics<parallel>], iteration_bounds = array<i64: 2>, scalar_prefetch = 0 : i64, scratch_operands = 2 : i64, tpu.core_type = #tpu.core_type<tc>, window_params = [{transform_indices = @transform_0, window_bounds = array<i64: 1, 16, 64>}, {pipeline_mode = #tpu.pipeline_mode<synchronous>, transform_indices = @transform_1, window_bounds = array<i64: 3, 72, 128>}, {pipeline_mode = #tpu.pipeline_mode<synchronous>, transform_indices = @transform_2, window_bounds = array<i64: 1, 128>}, {pipeline_mode = #tpu.pipeline_mode<synchronous>, transform_indices = @transform_3, window_bounds = array<i64: 3, 144, 128>}, {pipeline_mode = #tpu.pipeline_mode<synchronous>, transform_indices = @transform_4, window_bounds = array<i64: 1, 128>}, {transform_indices = @transform_5, window_bounds = array<i64: 1, 16, 128>}]} {
    %cst = arith.constant 0.000000e+00 : f32
    %0 = vector.broadcast %cst : f32 to vector<18x72xf32>
    %c0 = arith.constant 0 : index
    %c0_0 = arith.constant 0 : index
    %1 = vector.load %arg7[%c0, %c0_0] : memref<18x72xf32, #tpu.memory_space<vmem>>, vector<18x72xf32>
    tpu.vector_store %arg7[%c0, %c0_0], %0 {strides = array<i32>} : memref<18x72xf32, #tpu.memory_space<vmem>>, vector<18x72xf32>,
    %c0_1 = arith.constant 0 : index
    %c0_2 = arith.constant 0 : index
    %c0_3 = arith.constant 0 : index
    %2 = vector.load %arg1[%c0_1, %c0_2, %c0_3] : memref<1x16x64xf32, #tpu.memory_space<vmem>>, vector<1x16x64xf32>
    %3 = vector.shape_cast %2 : vector<1x16x64xf32> to vector<16x64xf32>
    %c1 = arith.constant 1 : index
    %c4 = arith.constant 4 : index
    %4 = vector.load %arg7[%c1, %c4] : memref<18x72xf32, #tpu.memory_space<vmem>>, vector<16x64xf32>
    tpu.vector_store %arg7[%c1, %c4], %3 {strides = array<i32>} : memref<18x72xf32, #tpu.memory_space<vmem>>, vector<16x64xf32>,
    %c0_4 = arith.constant 0 : index
    %c0_5 = arith.constant 0 : index
    %5 = vector.load %arg7[%c0_4, %c0_5] : memref<18x72xf32, #tpu.memory_space<vmem>>, vector<16x72xf32>
    %c0_6 = arith.constant 0 : index
    %c0_7 = arith.constant 0 : index
    %c0_8 = arith.constant 0 : index
    %6 = vector.load %arg2[%c0_6, %c0_7, %c0_8] : memref<3x72x128xf32, #tpu.memory_space<vmem>>, vector<1x72x128xf32>
    %7 = vector.shape_cast %6 : vector<1x72x128xf32> to vector<72x128xf32>
    %cst_9 = arith.constant dense<0.000000e+00> : vector<16x128xf32>
    %8 = tpu.matmul %5, %7, %cst_9 {dimension_numbers = #tpu.dot_dimension_numbers<[1], [0], [0], [1], [0, 0, 1, 1], [], []>} : vector<16x72xf32>, vector<72x128xf32>, vector<16x128xf32> -> vector<16x128xf32>
    %c1_10 = arith.constant 1 : index
    %c0_11 = arith.constant 0 : index
    %9 = vector.load %arg7[%c1_10, %c0_11] : memref<18x72xf32, #tpu.memory_space<vmem>>, vector<16x72xf32>
    %c1_12 = arith.constant 1 : index
    %c0_13 = arith.constant 0 : index
    %c0_14 = arith.constant 0 : index
    %10 = vector.load %arg2[%c1_12, %c0_13, %c0_14] : memref<3x72x128xf32, #tpu.memory_space<vmem>>, vector<1x72x128xf32>
    %11 = vector.shape_cast %10 : vector<1x72x128xf32> to vector<72x128xf32>
    %cst_15 = arith.constant dense<0.000000e+00> : vector<16x128xf32>
    %12 = tpu.matmul %9, %11, %cst_15 {dimension_numbers = #tpu.dot_dimension_numbers<[1], [0], [0], [1], [0, 0, 1, 1], [], []>} : vector<16x72xf32>, vector<72x128xf32>, vector<16x128xf32> -> vector<16x128xf32>
    %13 = arith.addf %8, %12 : vector<16x128xf32>
    %c2 = arith.constant 2 : index
    %c0_16 = arith.constant 0 : index
    %14 = vector.load %arg7[%c2, %c0_16] : memref<18x72xf32, #tpu.memory_space<vmem>>, vector<16x72xf32>
    %c2_17 = arith.constant 2 : index
    %c0_18 = arith.constant 0 : index
    %c0_19 = arith.constant 0 : index
    %15 = vector.load %arg2[%c2_17, %c0_18, %c0_19] : memref<3x72x128xf32, #tpu.memory_space<vmem>>, vector<1x72x128xf32>
    %16 = vector.shape_cast %15 : vector<1x72x128xf32> to vector<72x128xf32>
    %cst_20 = arith.constant dense<0.000000e+00> : vector<16x128xf32>
    %17 = tpu.matmul %14, %16, %cst_20 {dimension_numbers = #tpu.dot_dimension_numbers<[1], [0], [0], [1], [0, 0, 1, 1], [], []>} : vector<16x72xf32>, vector<72x128xf32>, vector<16x128xf32> -> vector<16x128xf32>
    %18 = arith.addf %13, %17 : vector<16x128xf32>
    %c0_21 = arith.constant 0 : index
    %c0_22 = arith.constant 0 : index
    %19 = vector.load %arg3[%c0_21, %c0_22] : memref<1x128xf32, #tpu.memory_space<vmem>>, vector<1x128xf32>
    %20 = vector.broadcast %19 : vector<1x128xf32> to vector<16x128xf32>
    %21 = arith.addf %18, %20 : vector<16x128xf32>
    %cst_23 = arith.constant 0.000000e+00 : f32
    %22 = vector.broadcast %cst_23 : f32 to vector<16x128xf32>
    %23 = arith.maximumf %21, %22 : vector<16x128xf32>
    %cst_24 = arith.constant 0.000000e+00 : f32
    %24 = vector.broadcast %cst_24 : f32 to vector<18x144xf32>
    %c0_25 = arith.constant 0 : index
    %c0_26 = arith.constant 0 : index
    %25 = vector.load %arg8[%c0_25, %c0_26] : memref<18x144xf32, #tpu.memory_space<vmem>>, vector<18x144xf32>
    tpu.vector_store %arg8[%c0_25, %c0_26], %24 {strides = array<i32>} : memref<18x144xf32, #tpu.memory_space<vmem>>, vector<18x144xf32>,
    %c1_27 = arith.constant 1 : index
    %c8 = arith.constant 8 : index
    %26 = vector.load %arg8[%c1_27, %c8] : memref<18x144xf32, #tpu.memory_space<vmem>>, vector<16x128xf32>
    tpu.vector_store %arg8[%c1_27, %c8], %23 {strides = array<i32>} : memref<18x144xf32, #tpu.memory_space<vmem>>, vector<16x128xf32>,
    %c0_28 = arith.constant 0 : index
    %c0_29 = arith.constant 0 : index
    %27 = vector.load %arg8[%c0_28, %c0_29] : memref<18x144xf32, #tpu.memory_space<vmem>>, vector<16x144xf32>
    %c0_30 = arith.constant 0 : index
    %c0_31 = arith.constant 0 : index
    %c0_32 = arith.constant 0 : index
    %28 = vector.load %arg4[%c0_30, %c0_31, %c0_32] : memref<3x144x128xf32, #tpu.memory_space<vmem>>, vector<1x144x128xf32>
    %29 = vector.shape_cast %28 : vector<1x144x128xf32> to vector<144x128xf32>
    %cst_33 = arith.constant dense<0.000000e+00> : vector<16x128xf32>
    %30 = tpu.matmul %27, %29, %cst_33 {dimension_numbers = #tpu.dot_dimension_numbers<[1], [0], [0], [1], [0, 0, 1, 1], [], []>} : vector<16x144xf32>, vector<144x128xf32>, vector<16x128xf32> -> vector<16x128xf32>
    %c1_34 = arith.constant 1 : index
    %c0_35 = arith.constant 0 : index
    %31 = vector.load %arg8[%c1_34, %c0_35] : memref<18x144xf32, #tpu.memory_space<vmem>>, vector<16x144xf32>
    %c1_36 = arith.constant 1 : index
    %c0_37 = arith.constant 0 : index
    %c0_38 = arith.constant 0 : index
    %32 = vector.load %arg4[%c1_36, %c0_37, %c0_38] : memref<3x144x128xf32, #tpu.memory_space<vmem>>, vector<1x144x128xf32>
    %33 = vector.shape_cast %32 : vector<1x144x128xf32> to vector<144x128xf32>
    %cst_39 = arith.constant dense<0.000000e+00> : vector<16x128xf32>
    %34 = tpu.matmul %31, %33, %cst_39 {dimension_numbers = #tpu.dot_dimension_numbers<[1], [0], [0], [1], [0, 0, 1, 1], [], []>} : vector<16x144xf32>, vector<144x128xf32>, vector<16x128xf32> -> vector<16x128xf32>
    %35 = arith.addf %30, %34 : vector<16x128xf32>
    %c2_40 = arith.constant 2 : index
    %c0_41 = arith.constant 0 : index
    %36 = vector.load %arg8[%c2_40, %c0_41] : memref<18x144xf32, #tpu.memory_space<vmem>>, vector<16x144xf32>
    %c2_42 = arith.constant 2 : index
    %c0_43 = arith.constant 0 : index
    %c0_44 = arith.constant 0 : index
    %37 = vector.load %arg4[%c2_42, %c0_43, %c0_44] : memref<3x144x128xf32, #tpu.memory_space<vmem>>, vector<1x144x128xf32>
    %38 = vector.shape_cast %37 : vector<1x144x128xf32> to vector<144x128xf32>
    %cst_45 = arith.constant dense<0.000000e+00> : vector<16x128xf32>
    %39 = tpu.matmul %36, %38, %cst_45 {dimension_numbers = #tpu.dot_dimension_numbers<[1], [0], [0], [1], [0, 0, 1, 1], [], []>} : vector<16x144xf32>, vector<144x128xf32>, vector<16x128xf32> -> vector<16x128xf32>
    %40 = arith.addf %35, %39 : vector<16x128xf32>
    %c0_46 = arith.constant 0 : index
    %c0_47 = arith.constant 0 : index
    %41 = vector.load %arg5[%c0_46, %c0_47] : memref<1x128xf32, #tpu.memory_space<vmem>>, vector<1x128xf32>
    %42 = vector.broadcast %41 : vector<1x128xf32> to vector<16x128xf32>
    %43 = arith.addf %40, %42 : vector<16x128xf32>
    %cst_48 = arith.constant 0.000000e+00 : f32
    %44 = vector.broadcast %cst_48 : f32 to vector<16x128xf32>
    %45 = arith.maximumf %43, %44 : vector<16x128xf32>
    %c0_49 = arith.constant 0 : index
    %c0_50 = arith.constant 0 : index
    %c0_51 = arith.constant 0 : index
    %46 = vector.load %arg6[%c0_49, %c0_50, %c0_51] : memref<1x16x128xf32, #tpu.memory_space<vmem>>, vector<1x16x128xf32>
    %47 = vector.shape_cast %46 : vector<1x16x128xf32> to vector<16x128xf32>
    %48 = vector.shape_cast %45 : vector<16x128xf32> to vector<1x16x128xf32>
    tpu.vector_store %arg6[%c0_49, %c0_50, %c0_51], %48 {strides = array<i32>} : memref<1x16x128xf32, #tpu.memory_space<vmem>>, vector<1x16x128xf32>,
    return
  }
  func.func @transform_0(%arg0: i32) -> (i32, i32, i32) {
    %c0_i32 = arith.constant 0 : i32
    %c0_i32_0 = arith.constant 0 : i32
    %c0_i32_1 = arith.constant 0 : i32
    return %arg0, %c0_i32, %c0_i32_0 : i32, i32, i32
  }
  func.func @transform_1(%arg0: i32) -> (i32, i32, i32) {
    %c0_i32 = arith.constant 0 : i32
    %c0_i32_0 = arith.constant 0 : i32
    %c0_i32_1 = arith.constant 0 : i32
    %c0_i32_2 = arith.constant 0 : i32
    return %c0_i32, %c0_i32_0, %c0_i32_1 : i32, i32, i32
  }
  func.func @transform_2(%arg0: i32) -> (i32, i32) {
    %c0_i32 = arith.constant 0 : i32
    %c0_i32_0 = arith.constant 0 : i32
    %c0_i32_1 = arith.constant 0 : i32
    return %c0_i32, %c0_i32_0 : i32, i32
  }
  func.func @transform_3(%arg0: i32) -> (i32, i32, i32) {
    %c0_i32 = arith.constant 0 : i32
    %c0_i32_0 = arith.constant 0 : i32
    %c0_i32_1 = arith.constant 0 : i32
    %c0_i32_2 = arith.constant 0 : i32
    return %c0_i32, %c0_i32_0, %c0_i32_1 : i32, i32, i32
  }
  func.func @transform_4(%arg0: i32) -> (i32, i32) {
    %c0_i32 = arith.constant 0 : i32
    %c0_i32_0 = arith.constant 0 : i32
    %c0_i32_1 = arith.constant 0 : i32
    return %c0_i32, %c0_i32_0 : i32, i32
  }
  func.func @transform_5(%arg0: i32) -> (i32, i32, i32) {
    %c0_i32 = arith.constant 0 : i32
    %c0_i32_0 = arith.constant 0 : i32
    %c0_i32_1 = arith.constant 0 : i32
    return %arg0, %c0_i32, %c0_i32_0 : i32, i32, i32
  }
}

</mosaic_0001>

<bundles_post_ra>
// kernel: tile.13
= control target key start
LH: loop header
LB: loop body
LE: loop exit
PB: predicated region body
PF: predicated region fallthrough
CT: control target
= control target key end

     0   :  { %s28_s0 = inlined_call_operand.vmem [shape: f32[8], index: 0, kind: input, shape index: {}]   ;;  %s29_s1 = inlined_call_operand.vmem [shape: f32[16,8], index: 1, kind: output, shape index: {}]  }
   0x1   :  { %v4_v0 = vld [vmem:[%s28_s0] ss:$0 sm:$0xff] }
   0x2   :  { %5 = vst [vmem:[%s29_s1] sm:$0xff] %v4_v0  ;;  %8 = vst [vmem:[%s29_s1 + $0x8] sm:$0xff] %v4_v0 }

// kernel: tile.14
= control target key start
LH: loop header
LB: loop body
LE: loop exit
PB: predicated region body
PF: predicated region fallthrough
CT: control target
= control target key end

     0   :  { %s131_s10 = smov 120   ;;  %s132_s11 = smov 104   ;;  %vm3_vm0 = vcmask 64512   ;;  %vm9_vm1 = vcmask 1048512   ;;  %vm15_vm2 = vcmask 982912   ;;  %vm21_vm3 = vcmask 917312   ;;  %s207_s0 = inlined_call_operand.vmem [shape: f32[16,8], index: 0, kind: input, shape index: {}]   ;;  %s208_s1 = inlined_call_operand.vmem [shape: f32[1,128], index: 1, kind: output, shape index: {}]  }
   0x1   :  { %v101_v0 = vld [vmem:[%s207_s0 + $0xf] sm:$0x1]   ;;  %v103_v1 = vld [vmem:[%s207_s0 + $0xd] sm:$0x1]   ;;  %v102_v2 = vld [vmem:[%s207_s0 + $0xe] sm:$0x1]  }
   0x2   :  { %7 = vrot.lane.b32.xlu0 %v101_v0, %s131_s10  ;;  %19 = vrot.lane.b32.xlu1 %v103_v1, %s132_s11  ;;  %v104_v3 = vld [vmem:[%s207_s0 + $0xc] sm:$0x1]   ;;  %s133_s16 = smov 112   ;;  %s134_s17 = smov 96   ;;  %v105_v4 = vld [vmem:[%s207_s0 + $0xb] sm:$0x1]  }
   0x3   :  { %v106_v5 = vld [vmem:[%s207_s0 + $0xa] sm:$0x1]   ;;  %v2_v6 = vld [vmem:[%s207_s0] sm:$0x1]   ;;  %s135_s24 = smov 88   ;;  %s136_s25 = smov 80  }
   0x4   :  { %4 = vst.msk [vmem:[#allocation0] sm:$0x1] %vm3_vm0, %v2_v6   ;;  %v107_v7 = vld [vmem:[%s207_s0 + $0x9] sm:$0x1]   ;;  %v108_v8 = vld [vmem:[%s207_s0 + $0x8] sm:$0x1]  }
   0x5   :  { %s137_s30 = smov 72   ;;  %s138_s2 = smov 64   ;;  %v109_v9 = vld [vmem:[%s207_s0 + $0x7] sm:$0x1]   ;;  %v110_v10 = vld [vmem:[%s207_s0 + $0x6] sm:$0x1]  }
   0x6   :  { %13 = vrot.lane.b32.xlu0 %v102_v2, %s133_s16  ;;  %25 = vrot.lane.b32.xlu1 %v104_v3, %s134_s17  ;;  %s139_s7 = smov 56   ;;  %s140_s8 = smov 48   ;;  %v111_v11 = vld [vmem:[%s207_s0 + $0x5] sm:$0x1]   ;;  %v112_v12 = vld [vmem:[%s207_s0 + $0x4] sm:$0x1]  }
   0x7   :  { %s141_s13 = smov 40   ;;  %s142_s14 = smov 32   ;;  %v113_v13 = vld [vmem:[%s207_s0 + $0x3] sm:$0x1]   ;;  %v114_v14 = vld [vmem:[%s207_s0 + $0x2] sm:$0x1]  }
   0x8   :  { %s143_s19 = smov 24   ;;  %s144_s20 = smov 16   ;;  %v115_v15 = vld [vmem:[%s207_s0 + $0x1] sm:$0x1]   ;;  %vm27_vm4 = vcmask 851712   ;;  %vm33_vm5 = vcmask 786112  }
   0x9   :  { %s145_s0 = smov 8   ;;  %vm39_vm6 = vcmask 720512   ;;  %vm45_vm7 = vcmask 654912   ;;  %vm51_vm8 = vcmask 589312   ;;  %vm57_vm9 = vcmask 523712  }
   0xa   :  { %31 = vrot.lane.b32.xlu0 %v105_v4, %s135_s24  ;;  %37 = vrot.lane.b32.xlu1 %v106_v5, %s136_s25  ;;  %vm63_vm10 = vcmask 458112   ;;  %vm69_vm11 = vcmask 392512   ;;  %vm75_vm12 = vcmask 326912   ;;  %vm81_vm13 = vcmask 261312  }
   0xb   :  { %vm87_vm14 = vcmask 195712   ;;  %vm93_vm15 = vcmask 130112  }
   0xe   :  { %43 = vrot.lane.b32.xlu0 %v107_v7, %s137_s30  ;;  %49 = vrot.lane.b32.xlu1 %v108_v8, %s138_s2 }
  0x12   :  { %55 = vrot.lane.b32.xlu0 %v109_v9, %s139_s7  ;;  %61 = vrot.lane.b32.xlu1 %v110_v10, %s140_s8 }
  0x16   :  { %67 = vrot.lane.b32.xlu0 %v111_v11, %s141_s13  ;;  %73 = vrot.lane.b32.xlu1 %v112_v12, %s142_s14 }
  0x1a   :  { %79 = vrot.lane.b32.xlu0 %v113_v13, %s143_s19  ;;  %85 = vrot.lane.b32.xlu1 %v114_v14, %s144_s20 }
  0x1e   :  { %91 = vrot.lane.b32.xlu0 %v115_v15, %s145_s0 }
  0x74   :  { %v8_v16 = vpop.permute.xlu0 %7   ;;  %v20_v17 = vpop.permute.xlu1 %19  }
  0x75   :  { %10 = vst.msk [vmem:[#allocation0] sm:$0x1] %vm9_vm1, %v8_v16  }
  0x78   :  { %v14_v18 = vpop.permute.xlu0 %13   ;;  %v26_v19 = vpop.permute.xlu1 %25  }
  0x79   :  { %16 = vst.msk [vmem:[#allocation0] sm:$0x1] %vm15_vm2, %v14_v18  }
  0x7a   :  { %22 = vst.msk [vmem:[#allocation0] sm:$0x1] %vm21_vm3, %v20_v17  }
  0x7b   :  { %28 = vst.msk [vmem:[#allocation0] sm:$0x1] %vm27_vm4, %v26_v19  }
  0x7c   :  { %v32_v20 = vpop.permute.xlu0 %31   ;;  %v38_v21 = vpop.permute.xlu1 %37  }
  0x7d   :  { %34 = vst.msk [vmem:[#allocation0] sm:$0x1] %vm33_vm5, %v32_v20  }
  0x7e   :  { %40 = vst.msk [vmem:[#allocation0] sm:$0x1] %vm39_vm6, %v38_v21  }
  0x80   :  { %v44_v22 = vpop.permute.xlu0 %43   ;;  %v50_v23 = vpop.permute.xlu1 %49  }
  0x81   :  { %46 = vst.msk [vmem:[#allocation0] sm:$0x1] %vm45_vm7, %v44_v22  }
  0x82   :  { %52 = vst.msk [vmem:[#allocation0] sm:$0x1] %vm51_vm8, %v50_v23  }
  0x84   :  { %v56_v24 = vpop.permute.xlu0 %55   ;;  %v62_v25 = vpop.permute.xlu1 %61  }
  0x85   :  { %58 = vst.msk [vmem:[#allocation0] sm:$0x1] %vm57_vm9, %v56_v24  }
  0x86   :  { %64 = vst.msk [vmem:[#allocation0] sm:$0x1] %vm63_vm10, %v62_v25  }
  0x88   :  { %v68_v26 = vpop.permute.xlu0 %67   ;;  %v74_v27 = vpop.permute.xlu1 %73  }
  0x89   :  { %70 = vst.msk [vmem:[#allocation0] sm:$0x1] %vm69_vm11, %v68_v26  }
  0x8a   :  { %76 = vst.msk [vmem:[#allocation0] sm:$0x1] %vm75_vm12, %v74_v27  }
  0x8c   :  { %v80_v28 = vpop.permute.xlu0 %79   ;;  %v86_v29 = vpop.permute.xlu1 %85  }
  0x8d   :  { %82 = vst.msk [vmem:[#allocation0] sm:$0x1] %vm81_vm13, %v80_v28  }
  0x8e   :  { %88 = vst.msk [vmem:[#allocation0] sm:$0x1] %vm87_vm14, %v86_v29  }
  0x90   :  { %v92_v30 = vpop.permute.xlu0 %91  }
  0x91   :  { %94 = vst.msk [vmem:[#allocation0] sm:$0x1] %vm93_vm15, %v92_v30  }
  0x98   :  { %v98_v31 = vld [vmem:[#allocation0] sm:$0x1] }
  0x99   :  { %100 = vst [vmem:[%s208_s1] sm:$0x1] %v98_v31 }

// kernel: double_conv.1
= control target key start
LH: loop header
LB: loop body
LE: loop exit
PB: predicated region body
PF: predicated region fallthrough
CT: control target
= control target key end

     0   :  { %s1345_s18 = smov 0   ;;  %s1688_s0 = inlined_call_operand.vmem [shape: f32[2,16,64], index: 0, kind: input, shape index: {}]   ;;  %s1689_s1 = inlined_call_operand.vmem [shape: f32[3,72,128], index: 1, kind: input, shape index: {}]   ;;  %s1690_s2 = inlined_call_operand.vmem [shape: f32[1,128], index: 2, kind: input, shape index: {}]   ;;  %s1691_s3 = inlined_call_operand.vmem [shape: f32[3,144,128], index: 3, kind: input, shape index: {}]   ;;  %s1692_s4 = inlined_call_operand.vmem [shape: f32[1,128], index: 4, kind: input, shape index: {}]   ;;  %s1693_s5 = inlined_call_operand.vmem [shape: f32[2,16,128], index: 5, kind: output, shape index: {}]  }
   0x1 LB: > { %s981_s19 = sadd.s32 4294967295, %s1309_s18   ;;  %p985_p0 = scmp.ge.s32.totalorder %s1309_s18, 1  ;;  %s1309_s18 = sphi %s1345_s18, %s15_s18  }
   0x2   : > { %p187_p1 = scmp.lt.s32.totalorder %s1309_s18, 3 }
   0x4   : > { %p188_p2 = pnand %p985_p0, %p187_p1 }
   0x5   : > { %p215_p3 = scmp.lt.s32.totalorder (!%p188_p2), %s981_s19, 1  ;;  %v990_v0 = vld [vmem:[%s1689_s1 + $0x48] sm:$0xff] (!%p188_p2)  ;;  %v991_v1 = vld [vmem:[%s1689_s1 + $0x50] sm:$0xff] (!%p188_p2)  ;;  %v992_v2 = vld [vmem:[%s1689_s1 + $0x58] sm:$0xff] (!%p188_p2)  ;;  %vm225_vm0 = vcmask (!%p188_p2), 588800   ;;  %vm228_vm1 = vcmask (!%p188_p2), 582656  }
   0x6   : > { %191 = sbr.rel (%p188_p2) target bundleno = 792 (0x318), region = 40  ;;  %v1158_v3 = vpack.c.bf16 (!%p188_p2), %v991_v1, %v990_v0  ;;  %v993_v4 = vld [vmem:[%s1689_s1 + $0x60] sm:$0xff] (!%p188_p2)  ;;  %v1311_v6 = vmov (!%p188_p2), 0.0   ;;  %v994_v7 = vld [vmem:[%s1689_s1 + $0x68] sm:$0xff] (!%p188_p2)  ;;  %v995_v8 = vld [vmem:[%s1689_s1 + $0x70] sm:$0xff] (!%p188_p2)  ;;  %s1312_s15 = smov (!%p188_p2), 4  }
   0x7   : > { %v1162_v5 = vpack.c.bf16 (!%p188_p2), %v993_v4, %v992_v2  ;;  %226 = vst.msk [vmem:[#allocation2] sm:$0xff] (!%p188_p2), %vm225_vm0, %v1311_v6  ;;  %227 = vst.msk [vmem:[#allocation2 + $0x8] sm:$0xff] (!%p188_p2), %vm225_vm0, %v1311_v6  ;;  %v1166_v9 = vpack.c.bf16 (!%p188_p2), %v995_v8, %v994_v7  ;;  %v996_v11 = vld [vmem:[%s1689_s1 + $0x78] sm:$0xff] (!%p188_p2)  ;;  %v997_v12 = vld [vmem:[%s1689_s1 + $0x80] sm:$0xff] (!%p188_p2)  ;;  %vm240_vm2 = vcmask (!%p188_p2), 556064   ;;  %vm540_vm3 = vcmask (!%p188_p2), 123904  }
   0x8   : > { %534 = vst [vmem:[#allocation3] sm:$0xff] (!%p188_p2), %v1311_v6  ;;  %537 = vst [vmem:[#allocation3 + $0x10] sm:$0xff] (!%p188_p2), %v1311_v6  ;;  %1159 = vmatprep.subr.bf16.mxu0 (!%p188_p2), %v1158_v3  ;;  %v1170_v14 = vpack.c.bf16 (!%p188_p2), %v997_v12, %v996_v11  ;;  %v998_v15 = vld [vmem:[%s1689_s1 + $0x88] sm:$0xff] (!%p188_p2)  ;;  %v245_v16 = vld [vmem:[%s1689_s1] sm:$0xff] (!%p188_p2)  ;;  %v1313_v53 = vmov (!%p188_p2), 0.0|0.0   ;;  %vm535_vm4 = vcmask (!%p188_p2), 130048  }
   0x9   : > { %539 = vst [vmem:[#allocation3 + $0x20] sm:$0x3] (!%p188_p2), %v1311_v6  ;;  %229 = vst.msk [vmem:[#allocation2 + $0x10] sm:$0x3] (!%p188_p2), %vm228_vm1, %v1311_v6  ;;  %1161 = vmatpush3.bf16.msra.mxu0 (!%p188_p2), %v1158_v3  ;;  %v246_v17 = vld [vmem:[%s1689_s1 + $0x8] sm:$0xff] (!%p188_p2)  ;;  %v247_v22 = vld [vmem:[%s1689_s1 + $0x10] sm:$0xff] (!%p188_p2)  ;;  %1206 = vmatprep.subr.bf16.mxu1 (!%p188_p2), %v1313_v53 }
   0xa   : > { %1163 = vmatprep.subr.bf16.mxu0 (!%p188_p2), %v1162_v5  ;;  %v1174_v18 = vpack.c.bf16 (!%p188_p2), %v246_v17, %v245_v16  ;;  %v248_v23 = vld [vmem:[%s1689_s1 + $0x18] sm:$0xff] (!%p188_p2)  ;;  %v249_v26 = vld [vmem:[%s1689_s1 + $0x20] sm:$0xff] (!%p188_p2)  ;;  %v250_v27 = vld [vmem:[%s1689_s1 + $0x28] sm:$0xff] (!%p188_p2)  ;;  %541 = vst.msk [vmem:[#allocation3 + $0x28] sm:$0x3] (!%p188_p2), %vm540_vm3, %v1311_v6  ;;  %vm544_vm5 = vcmask (!%p188_p2), 1040384  }
   0xb   : > { %v1178_v24 = vpack.c.bf16 (!%p188_p2), %v248_v23, %v247_v22  ;;  %v1182_v29 = vpack.c.bf16 (!%p188_p2), %v250_v27, %v249_v26  ;;  %v251_v30 = vld [vmem:[%s1689_s1 + $0x30] sm:$0xff] (!%p188_p2)  ;;  %v252_v31 = vld [vmem:[%s1689_s1 + $0x38] sm:$0xff] (!%p188_p2)  ;;  %v253_v33 = vld [vmem:[%s1689_s1 + $0x40] sm:$0xff] (!%p188_p2)  ;;  %536 = vst.msk [vmem:[#allocation3 + $0x8] sm:$0xff] (!%p188_p2), %vm535_vm4, %v1311_v6  ;;  %s1314_s20 = smov (!%p188_p2), 8   ;;  %vm565_vm6 = vcmask (!%p188_p2), 1040448  }
   0xc   : > { %v1186_v32 = vpack.c.bf16 (!%p188_p2), %v252_v31, %v251_v30  ;;  %v1003_v34 = vld [vmem:[%s1689_s1 + $0x90] sm:$0xff] (!%p188_p2)  ;;  %v1004_v35 = vld [vmem:[%s1689_s1 + $0x98] sm:$0xff] (!%p188_p2)  ;;  %v1005_v36 = vld [vmem:[%s1689_s1 + $0xa0] sm:$0xff] (!%p188_p2)  ;;  %538 = vst.msk [vmem:[#allocation3 + $0x18] sm:$0xff] (!%p188_p2), %vm535_vm4, %v1311_v6  ;;  %vm567_vm7 = vcmask (!%p188_p2), 57344   ;;  %vm557_vm8 = vcmask (!%p188_p2), 1047617  }
   0xd   : > { %s1695_s19 = smov (!%p215_p3, %s981_s19), 1  ;;  %1165 = vmatpush3.bf16.msra.mxu0 %v1162_v5  ;;  %v1006_v37 = vld [vmem:[%s1689_s1 + $0xa8] sm:$0xff]  ;;  %v1190_v38 = vpack.c.bf16 %v1004_v35, %v1003_v34  ;;  %v1007_v41 = vld [vmem:[%s1689_s1 + $0xb0] sm:$0xff]  ;;  %v1008_v42 = vld [vmem:[%s1689_s1 + $0xb8] sm:$0xff]  ;;  %vm559_vm9 = vcmask 64513   ;;  %vm561_vm10 = vcmask 1047616  }
   0xe   : > { %s1060_s7 = sshll.u32 %s1695_s19, 4  ;;  %1167 = vmatprep.subr.bf16.mxu0 %v1166_v9  ;;  %v1194_v39 = vpack.c.bf16 %v1006_v37, %v1005_v36  ;;  %v1198_v44 = vpack.c.bf16 %v1008_v42, %v1007_v41  ;;  %v1009_v45 = vld [vmem:[%s1689_s1 + $0xc0] sm:$0xff]  ;;  %v1010_v46 = vld [vmem:[%s1689_s1 + $0xc8] sm:$0xff]  ;;  %v1011_v48 = vld [vmem:[%s1689_s1 + $0xd0] sm:$0xff]  ;;  %vm563_vm11 = vcmask 64512   ;;  %vm620_vm12 = vcmask 1046528  }
   0xf   : > { %s219_s10 = scalar_lea.vmem %s1688_s0, %s1060_s7  ;;  %v1202_v47 = vpack.c.bf16 %v1010_v46, %v1009_v45  ;;  %v1015_v50 = vld [vmem:[%s1691_s3 + $0x90] sm:$0xff]  ;;  %v1016_v51 = vld [vmem:[%s1691_s3 + $0x98] sm:$0xff]  ;;  %v1037_v52 = vld [vmem:[%s1691_s3 + $0x120] sm:$0xff]  ;;  %vm819_vm13 = vcmask 1045504  }
  0x10   : > { %v230_v10 = vld [vmem:[%s219_s10] sm:$0xff]  ;;  %v231_v13 = vld [vmem:[%s219_s10 + $0x8] sm:$0xff]  ;;  %v1207_v54 = vpack.c.bf16 %v1016_v51, %v1015_v50  ;;  %v1039_v59 = vld [vmem:[%s1691_s3 + $0x130] sm:$0xff] }
  0x11   : > { %234 = vrot.lane.b32.xlu0 %v230_v10, %s1312_s15  ;;  %1169 = vmatpush3.bf16.msra.mxu0 %v1166_v9  ;;  %v1038_v55 = vld [vmem:[%s1691_s3 + $0x128] sm:$0xff]  ;;  %v1017_v56 = vld [vmem:[%s1691_s3 + $0xa0] sm:$0xff]  ;;  %v1040_v60 = vld [vmem:[%s1691_s3 + $0x138] sm:$0xff] }
  0x12   : > { %1171 = vmatprep.subr.bf16.mxu0 %v1170_v14  ;;  %v1018_v57 = vld [vmem:[%s1691_s3 + $0xa8] sm:$0xff]  ;;  %v1261_v58 = vpack.c.bf16 %v1038_v55, %v1037_v52  ;;  %1208 = vmatpush1.bf16.msra.mxu1 %v1207_v54  ;;  %v1264_v62 = vpack.c.bf16 %v1040_v60, %v1039_v59  ;;  %v1019_v63 = vld [vmem:[%s1691_s3 + $0xb0] sm:$0xff]  ;;  %v1020_v0 = vld [vmem:[%s1691_s3 + $0xb8] sm:$0xff] }
  0x13   : > { %v1210_v61 = vpack.c.bf16 %v1018_v57, %v1017_v56  ;;  %1209 = vmatprep.subr.bf16.mxu1 %v1313_v53  ;;  %v1041_v1 = vld [vmem:[%s1691_s3 + $0x140] sm:$0xff]  ;;  %v1042_v2 = vld [vmem:[%s1691_s3 + $0x148] sm:$0xff]  ;;  %v1213_v3 = vpack.c.bf16 %v1020_v0, %v1019_v63  ;;  %v1043_v8 = vld [vmem:[%s1691_s3 + $0x150] sm:$0xff] }
  0x14   : > { %v1267_v4 = vpack.c.bf16 %v1042_v2, %v1041_v1  ;;  %v1021_v5 = vld [vmem:[%s1691_s3 + $0xc0] sm:$0xff]  ;;  %v1022_v7 = vld [vmem:[%s1691_s3 + $0xc8] sm:$0xff]  ;;  %v1044_v9 = vld [vmem:[%s1691_s3 + $0x158] sm:$0xff] }
  0x15   : > { %236 = vrot.lane.b32.xlu0 %v231_v13, %s1312_s15  ;;  %1173 = vmatpush3.bf16.msra.mxu0 %v1170_v14  ;;  %v1216_v10 = vpack.c.bf16 %v1022_v7, %v1021_v5  ;;  %v1270_v11 = vpack.c.bf16 %v1044_v9, %v1043_v8  ;;  %v1023_v12 = vld [vmem:[%s1691_s3 + $0xd0] sm:$0xff]  ;;  %v1024_v13 = vld [vmem:[%s1691_s3 + $0xd8] sm:$0xff]  ;;  %v1045_v14 = vld [vmem:[%s1691_s3 + $0x160] sm:$0xff]  ;;  %s224_s15 = scalar_lea.vmem %s1693_s5, %s1060_s7 }
  0x16   : > { %1111 = vmatprep.subr.mxu0 %v998_v15  ;;  %1211 = vmatpush1.bf16.msra.mxu1 %v1210_v61  ;;  %v1219_v16 = vpack.c.bf16 %v1024_v13, %v1023_v12  ;;  %v1048_v22 = vld [vmem:[%s1691_s3 + $0x178] sm:$0xff]  ;;  %v1049_v6 = vld [vmem:[%s1691_s3 + $0x180] sm:$0xff]  ;;  %v1050_v27 = vld [vmem:[%s1691_s3 + $0x188] sm:$0xff] }
  0x17   : > { %1212 = vmatprep.subr.bf16.mxu1 %v1313_v53  ;;  %v1029_v30 = vld [vmem:[%s1691_s3 + $0x100] sm:$0xff]  ;;  %v1030_v31 = vld [vmem:[%s1691_s3 + $0x108] sm:$0xff]  ;;  %v1052_v35 = vld [vmem:[%s1691_s3 + $0x198] sm:$0xff] }
  0x18   : > { %v1228_v34 = vpack.c.bf16 %v1030_v31, %v1029_v30  ;;  %v1031_v36 = vld [vmem:[%s1691_s3 + $0x110] sm:$0xff]  ;;  %v1032_v37 = vld [vmem:[%s1691_s3 + $0x118] sm:$0xff]  ;;  %v1053_v41 = vld [vmem:[%s1691_s3 + $0x1a0] sm:$0xff] }
  0x19   : > { %1112 = vmatpush3.msra.mxu0 %v998_v15  ;;  %v1046_v15 = vld [vmem:[%s1691_s3 + $0x168] sm:$0xff]  ;;  %v1231_v45 = vpack.c.bf16 %v1032_v37, %v1031_v36  ;;  %v573_v59 = vld [vmem:[%s1691_s3] sm:$0xff]  ;;  %v575_v12 = vld [vmem:[%s1691_s3 + $0x10] sm:$0xff] }
  0x1a   : > { %1175 = vmatprep.subr.bf16.mxu0 %v1174_v18  ;;  %1214 = vmatpush1.bf16.msra.mxu1 %v1213_v3  ;;  %v1273_v17 = vpack.c.bf16 %v1046_v15, %v1045_v14  ;;  %v1054_v42 = vld [vmem:[%s1691_s3 + $0x1a8] sm:$0xff]  ;;  %v579_v31 = vld [vmem:[%s1691_s3 + $0x30] sm:$0xff] }
  0x1b   : > { %1215 = vmatprep.subr.bf16.mxu1 %v1313_v53  ;;  %v574_v60 = vld [vmem:[%s1691_s3 + $0x8] sm:$0xff]  ;;  %v583_v37 = vld [vmem:[%s1691_s3 + $0x50] sm:$0xff] }
  0x1e   : > { %1217 = vmatpush1.bf16.msra.mxu1 %v1216_v10  ;;  %v1234_v10 = vpack.c.bf16 %v574_v60, %v573_v59 }
  0x1f   : > { %1218 = vmatprep.subr.bf16.mxu1 %v1313_v53 }
  0x22   : > { %1220 = vmatpush1.bf16.msra.mxu1 %v1219_v16 }
  0x23   : > { %1221 = vmatprep.subr.bf16.mxu1 %v1313_v53 }
  0x83   : > { %v235_v19 = vpop.permute.xlu0 %234 }
  0x84   : > { %241 = vst.msk [vmem:[#allocation2 + $0x1] sm:$0xff] %vm240_vm2, %v235_v19  ;;  %v1026_v19 = vld [vmem:[%s1691_s3 + $0xe8] sm:$0xff] }
  0x87   : > { %v237_v20 = vpop.permute.xlu0 %236 }
  0x88   : > { %242 = vst.msk [vmem:[#allocation2 + $0x9] sm:$0xff] %vm240_vm2, %v237_v20 }
  0x8b   : > { %v254_v21 = vld [vmem:[#allocation2 + $0x1] sm:$0xff] }
  0x8c   : > { %1113 = vmatprep.mubr.msk.f32.mxu0 %vm225_vm0, %v254_v21  ;;  %v243_v28 = vld [vmem:[#allocation2] sm:$0xff]  ;;  %v1047_v21 = vld [vmem:[%s1691_s3 + $0x170] sm:$0xff] }
  0x8d   : > { %v1276_v23 = vpack.c.bf16 %v1048_v22, %v1047_v21 }
  0x8f   : > { %v255_v25 = vld [vmem:[#allocation2 + $0x9] sm:$0xff] }
  0x90   : > { %1114 = vmatmul.mubr.msk.f32.vlgmr.msra.gmra.mrb[0].mxu0 %vm225_vm0, %v255_v25  ;;  %v244_v40 = vld [vmem:[#allocation2 + $0x8] sm:$0xff]  ;;  %v1028_v25 = vld [vmem:[%s1691_s3 + $0xf8] sm:$0xff] }
  0x91   : > { %1177 = vmatpush3.bf16.msra.mxu0 %v1174_v18  ;;  %1134 = vmatprep.mubr.msk.f32.mxu0 %vm225_vm0, %v243_v28  ;;  %v428_v43 = vld [vmem:[#allocation2 + $0x2] sm:$0xff]  ;;  %v429_v49 = vld [vmem:[#allocation2 + $0xa] sm:$0xff]  ;;  %v1014_v28 = vld [vmem:[%s1690_s2] ss:$0 sm:$0xff] }
  0x92   : > { %1179 = vmatprep.subr.bf16.mxu0 %v1178_v24  ;;  %v1025_v18 = vld [vmem:[%s1691_s3 + $0xe0] sm:$0xff] }
  0x93   : > { %v1222_v20 = vpack.c.bf16 %v1026_v19, %v1025_v18  ;;  %v576_v18 = vld [vmem:[%s1691_s3 + $0x18] sm:$0xff] }
  0x95   : > { %1181 = vmatpush3.bf16.msra.mxu0 %v1178_v24  ;;  %1223 = vmatpush1.bf16.msra.mxu1 %v1222_v20  ;;  %v1027_v24 = vld [vmem:[%s1691_s3 + $0xf0] sm:$0xff] }
  0x96   : > { %1183 = vmatprep.subr.bf16.mxu0 %v1182_v29  ;;  %1224 = vmatprep.subr.bf16.mxu1 %v1313_v53  ;;  %v1225_v26 = vpack.c.bf16 %v1028_v25, %v1027_v24  ;;  %v1237_v24 = vpack.c.bf16 %v576_v18, %v575_v12 }
  0x99   : > { %1185 = vmatpush3.bf16.msra.mxu0 %v1182_v29  ;;  %v1279_v29 = vpack.c.bf16 %v1050_v27, %v1049_v6  ;;  %1226 = vmatpush1.bf16.msra.mxu1 %v1225_v26  ;;  %v577_v26 = vld [vmem:[%s1691_s3 + $0x20] sm:$0xff]  ;;  %v578_v6 = vld [vmem:[%s1691_s3 + $0x28] sm:$0xff] }
  0x9a   : > { %1187 = vmatprep.subr.bf16.mxu0 %v1186_v32  ;;  %1227 = vmatprep.subr.bf16.mxu1 %v1313_v53  ;;  %v1240_v30 = vpack.c.bf16 %v578_v6, %v577_v26 }
  0x9d   : > { %1189 = vmatpush3.bf16.msra.mxu0 %v1186_v32  ;;  %v1051_v32 = vld [vmem:[%s1691_s3 + $0x190] sm:$0xff]  ;;  %1229 = vmatpush1.bf16.msra.mxu1 %v1228_v34  ;;  %v581_v34 = vld [vmem:[%s1691_s3 + $0x40] sm:$0xff] }
  0x9e   : > { %1132 = vmatprep.subr.mxu0 %v253_v33  ;;  %1230 = vmatprep.subr.bf16.mxu1 %v1313_v53 }
  0xa1   : > { %1133 = vmatpush3.msra.mxu0 %v253_v33  ;;  %1232 = vmatpush1.bf16.msra.mxu1 %v1231_v45 }
  0xa2   : > { %1135 = vmatmul.mubr.msk.f32.vlgmr.msra.gmra.mrb[0].mxu0 %vm225_vm0, %v244_v40  ;;  %1191 = vmatprep.subr.bf16.mxu0 %v1190_v38  ;;  %v1282_v40 = vpack.c.bf16 %v1052_v35, %v1051_v32  ;;  %v580_v32 = vld [vmem:[%s1691_s3 + $0x38] sm:$0xff]  ;;  %v582_v35 = vld [vmem:[%s1691_s3 + $0x48] sm:$0xff] }
  0xa3   : > { %1193 = vmatpush3.bf16.msra.mxu0 %v1190_v38  ;;  %1155 = vmatprep.mubr.msk.f32.mxu0 %vm225_vm0, %v428_v43  ;;  %v1246_v36 = vpack.c.bf16 %v582_v35, %v581_v34 }
  0xa4   : > { %1195 = vmatprep.subr.bf16.mxu0 %v1194_v39  ;;  %1233 = vmatprep.subr.bf16.mxu1 %v1313_v53 }
  0xa7   : > { %1197 = vmatpush3.bf16.msra.mxu0 %v1194_v39 }
  0xa8   : > { %1199 = vmatprep.subr.bf16.mxu0 %v1198_v44 }
  0xab   : > { %1201 = vmatpush3.bf16.msra.mxu0 %v1198_v44 }
  0xac   : > { %1203 = vmatprep.subr.bf16.mxu0 %v1202_v47 }
  0xaf   : > { %1205 = vmatpush3.bf16.msra.mxu0 %v1202_v47  ;;  %v1285_v47 = vpack.c.bf16 %v1054_v42, %v1053_v41  ;;  %v586_v41 = vld [vmem:[%s1691_s3 + $0x68] sm:$0xff] }
  0xb0   : > { %1153 = vmatprep.subr.mxu0 %v1011_v48 }
  0xb3   : > { %1154 = vmatpush3.msra.mxu0 %v1011_v48 }
  0xb4   : > { %1156 = vmatmul.mubr.msk.f32.vlgmr.msra.gmra.mrb[0].mxu0 %vm225_vm0, %v429_v49  ;;  %1260 = vmatprep.subr.bf16.mxu0 %v1313_v53 }
  0xb5   : > { %1262 = vmatpush1.bf16.msra.mxu0 %v1261_v58 }
  0xb6   : > { %1263 = vmatprep.subr.bf16.mxu0 %v1313_v53 }
  0xb9   : > { %1265 = vmatpush1.bf16.msra.mxu0 %v1264_v62 }
  0xba   : > { %1266 = vmatprep.subr.bf16.mxu0 %v1313_v53 }
  0xbd   : > { %1268 = vmatpush1.bf16.msra.mxu0 %v1267_v4 }
  0xbe   : > { %1269 = vmatprep.subr.bf16.mxu0 %v1313_v53 }
  0xc1   : > { %1271 = vmatpush1.bf16.msra.mxu0 %v1270_v11 }
  0xc2   : > { %1272 = vmatprep.subr.bf16.mxu0 %v1313_v53 }
  0xc5   : > { %1274 = vmatpush1.bf16.msra.mxu0 %v1273_v17 }
  0xc6   : > { %1275 = vmatprep.subr.bf16.mxu0 %v1313_v53 }
  0xc9   : > { %1277 = vmatpush1.bf16.msra.mxu0 %v1276_v23 }
  0xca   : > { %1278 = vmatprep.subr.bf16.mxu0 %v1313_v53 }
  0xcd   : > { %1280 = vmatpush1.bf16.msra.mxu0 %v1279_v29 }
  0xce   : > { %1281 = vmatprep.subr.bf16.mxu0 %v1313_v53 }
  0xd1   : > { %1283 = vmatpush1.bf16.msra.mxu0 %v1282_v40  ;;  %v585_v40 = vld [vmem:[%s1691_s3 + $0x60] sm:$0xff] }
  0xd2   : > { %1284 = vmatprep.subr.bf16.mxu0 %v1313_v53  ;;  %v1252_v42 = vpack.c.bf16 %v586_v41, %v585_v40 }
  0xd5   : > { %1286 = vmatpush1.bf16.msra.mxu0 %v1285_v47  ;;  %v590_v47 = vld [vmem:[%s1691_s3 + $0x88] sm:$0xff] }
 0x187   : > { %v1157_v33 = vpop.f32.mrb[0].mxu0 }
 0x188   : > { %v531_v38 = vadd.f32 %v1157_v33, %v1014_v28  ;;  %v512_v39 = vpop.f32.mrb[1].mxu0  ;;  %v1243_v33 = vpack.c.bf16 %v580_v32, %v579_v31 }
 0x189   : > { %v530_v43 = vadd.f32 %v1014_v28, %v512_v39 }
 0x18a   : > { %v533_v44 = vmax.f32 %v531_v38, 0.0  ;;  %v584_v38 = vld [vmem:[%s1691_s3 + $0x58] sm:$0xff] }
 0x18b   : > { %v532_v46 = vmax.f32 %v530_v43, 0.0  ;;  %v1249_v39 = vpack.c.bf16 %v584_v38, %v583_v37  ;;  %v587_v43 = vld [vmem:[%s1691_s3 + $0x70] sm:$0xff] }
 0x18c   : > { %v546_v48 = vrot.slane %v533_v44, 7  ;;  %v588_v44 = vld [vmem:[%s1691_s3 + $0x78] sm:$0xff] }
 0x18d   : > { %v545_v49 = vrot.slane %v532_v46, 7  ;;  %v1255_v45 = vpack.c.bf16 %v588_v44, %v587_v43  ;;  %v589_v46 = vld [vmem:[%s1691_s3 + $0x80] sm:$0xff] }
 0x18e   : > { %552 = vrot.lane.b32.xlu0 %v546_v48, %s1314_s20 }
 0x18f   : > { %548 = vrot.lane.b32.xlu1 %v545_v49, %s1314_s20  ;;  %v547_v50 = vsel %vm544_vm5, %v545_v49, %v546_v48  ;;  %v1258_v48 = vpack.c.bf16 %v590_v47, %v589_v46 }
 0x193   : > { %550 = vrot.lane.b32.xlu1 %v547_v50, %s1314_s20 }
 0x200   : > { %v553_v51 = vpop.permute.xlu0 %552 }
 0x201   : > { %566 = vst.msk [vmem:[#allocation3 + $0x20] sm:$0x1] %vm565_vm6, %v553_v51  ;;  %v549_v52 = vpop.permute.xlu1 %548 }
 0x202   : > { %568 = vst.msk [vmem:[#allocation3 + $0x28] sm:$0x1] %vm567_vm7, %v553_v51 }
 0x203   : > { %558 = vst.msk [vmem:[#allocation3] sm:$0xfe] %vm557_vm8, %v549_v52 }
 0x204   : > { %560 = vst.msk [vmem:[#allocation3 + $0x8] sm:$0xfe] %vm559_vm9, %v549_v52 }
 0x205   : > { %v551_v54 = vpop.permute.xlu1 %550 }
 0x206   : > { %562 = vst.msk [vmem:[#allocation3 + $0x10] sm:$0xff] %vm561_vm10, %v551_v54 }
 0x207   : > { %564 = vst.msk [vmem:[#allocation3 + $0x18] sm:$0xff] %vm563_vm11, %v551_v54 }
 0x208   : > { %v593_v17 = vld [vmem:[#allocation3 + $0x20] sm:$0x1] }
 0x209   : > { %v594_v61 = vld [vmem:[#allocation3 + $0x28] sm:$0x1]  ;;  %v794_v19 = vld [vmem:[#allocation3 + $0x20] sm:$0x3]  ;;  %v627_v23 = vrot.slane %v593_v17, 1 }
 0x20a   : > { %v591_v57 = vld [vmem:[#allocation3] sm:$0xfe]  ;;  %v795_v9 = vld [vmem:[#allocation3 + $0x28] sm:$0x3]  ;;  %v629_v11 = vrot.slane %v594_v61, 1  ;;  %v826_v25 = vrot.slane %v794_v19, 2 }
 0x20b   : > { %v592_v55 = vld [vmem:[#allocation3 + $0x8] sm:$0xfe]  ;;  %v792_v58 = vld [vmem:[#allocation3] sm:$0xfc]  ;;  %v621_v2 = vrot.slane %v591_v57, 1  ;;  %v828_v20 = vrot.slane %v795_v9, 2 }
 0x20c   : > { %v793_v56 = vld [vmem:[#allocation3 + $0x8] sm:$0xfc]  ;;  %v624_v63 = vrot.slane %v592_v55, 1  ;;  %v820_v3 = vrot.slane %v792_v58, 2  ;;  %v569_v49 = vld [vmem:[#allocation3] sm:$0xff] }
 0x20d   : > { %v823_v0 = vrot.slane %v793_v56, 2  ;;  %v1599_v1 = vld [vmem:[#allocation3 + $0x10] sm:$0xff]  ;;  %v570_v29 = vld [vmem:[#allocation3 + $0x8] sm:$0xff] }
 0x20e   : > { %v1597_v62 = vld [vmem:[#allocation3 + $0x18] sm:$0xff]  ;;  %v622_v7 = vrot.slane %v1599_v1, 1  ;;  %v821_v8 = vrot.slane %v1599_v1, 2  ;;  %v1057_v61 = vld [vmem:[%s1692_s4] ss:$0 sm:$0xff] }
 0x20f   : > { %v625_v4 = vrot.slane %v1597_v62, 1  ;;  %v824_v5 = vrot.slane %v1597_v62, 2 }
 0x210   : > { %v623_v15 = vsel %vm620_vm12, %v621_v2, %v622_v7  ;;  %v822_v16 = vsel %vm819_vm13, %v820_v3, %v821_v8  ;;  %v628_v27 = vsel %vm620_vm12, %v622_v7, %v627_v23  ;;  %v827_v28 = vsel %vm819_vm13, %v821_v8, %v826_v25 }
 0x211   : > { %v626_v13 = vsel %vm620_vm12, %v624_v63, %v625_v4  ;;  %v825_v14 = vsel %vm819_vm13, %v823_v0, %v824_v5  ;;  %v630_v21 = vsel %vm620_vm12, %v625_v4, %v629_v11  ;;  %v829_v22 = vsel %vm819_vm13, %v824_v5, %v828_v20 }
 0x212   : > { %1033 = vmatprep.mubr.msk.f32.mxu1 %vm535_vm4, %v626_v13  ;;  %1055 = vmatprep.mubr.msk.f32.mxu0 %vm535_vm4, %v825_v14 }
 0x213   : > { %702 = vmatmul.mubr.f32.vlgmr.msra.gmra.mrb[0].mxu1 %v623_v15  ;;  %901 = vmatmul.mubr.f32.vlgmr.msra.gmra.mrb[2].mxu0 %v822_v16 }
 0x214   : > { %1235 = vmatpush1.bf16.msra.mxu1 %v1234_v10  ;;  %1034 = vmatprep.mubr.msk.f32.mxu1 %vm535_vm4, %v630_v21 }
 0x215   : > { %1056 = vmatprep.mubr.msk.f32.mxu0 %vm535_vm4, %v829_v22  ;;  %1236 = vmatprep.subr.bf16.mxu1 %v1313_v53 }
 0x217   : > { %707 = vmatmul.mubr.f32.gmra.mrb[2].mxu1 %v628_v27  ;;  %906 = vmatmul.mubr.f32.gmra.mrb[4].mxu0 %v827_v28 }
 0x218   : > { %1238 = vmatpush1.bf16.msra.mxu1 %v1237_v24  ;;  %1035 = vmatprep.mubr.msk.f32.mxu1 %vm535_vm4, %v570_v29 }
 0x219   : > { %1239 = vmatprep.subr.bf16.mxu1 %v1313_v53 }
 0x21c   : > { %1241 = vmatpush1.bf16.msra.mxu1 %v1240_v30 }
 0x21d   : > { %1242 = vmatprep.subr.bf16.mxu1 %v1313_v53 }
 0x220   : > { %1244 = vmatpush1.bf16.msra.mxu1 %v1243_v33 }
 0x221   : > { %1245 = vmatprep.subr.bf16.mxu1 %v1313_v53 }
 0x224   : > { %1247 = vmatpush1.bf16.msra.mxu1 %v1246_v36 }
 0x225   : > { %1248 = vmatprep.subr.bf16.mxu1 %v1313_v53 }
 0x228   : > { %1250 = vmatpush1.bf16.msra.mxu1 %v1249_v39 }
 0x229   : > { %1251 = vmatprep.subr.bf16.mxu1 %v1313_v53 }
 0x22c   : > { %1253 = vmatpush1.bf16.msra.mxu1 %v1252_v42 }
 0x22d   : > { %1254 = vmatprep.subr.bf16.mxu1 %v1313_v53 }
 0x230   : > { %1256 = vmatpush1.bf16.msra.mxu1 %v1255_v45 }
 0x231   : > { %1257 = vmatprep.subr.bf16.mxu1 %v1313_v53 }
 0x234   : > { %1259 = vmatpush1.bf16.msra.mxu1 %v1258_v48 }
 0x237   : > { %782 = vmatmul.mubr.f32.vlgmr.msra.gmra.mrb[4].mxu1 %v569_v49 }
 0x238   : > { %1036 = vmatprep.mubr.msk.f32.mxu1 %vm535_vm4, %v1597_v62 }
 0x23b   : > { %787 = vmatmul.mubr.f32.gmra.mrb[6].mxu1 %v1599_v1 }
 0x2e6   : > { %v703_v50 = vpop.f32.mrb[0].mxu1  ;;  %v902_v51 = vpop.f32.mrb[2].mxu0 }
 0x2e7   : > { %v705_v52 = vpop.f32.mrb[1].mxu1  ;;  %v904_v54 = vpop.f32.mrb[3].mxu0 }
 0x2ea   : > { %v708_v55 = vpop.f32.mrb[2].mxu1  ;;  %v907_v56 = vpop.f32.mrb[4].mxu0 }
 0x2eb   : > { %v710_v57 = vpop.f32.mrb[3].mxu1  ;;  %v909_v58 = vpop.f32.mrb[5].mxu0 }
 0x30a   : > { %v783_v59 = vpop.f32.mrb[4].mxu1 }
 0x30b   : > { %v784_v60 = vadd.f32 %v783_v59, %v703_v50  ;;  %v785_v53 = vpop.f32.mrb[5].mxu1 }
 0x30d   : > { %v911_v63 = vadd.f32 %v902_v51, %v784_v60 }
 0x30e   : > { %v788_v62 = vpop.f32.mrb[6].mxu1 }
 0x30f   : > { %v920_v0 = vadd.f32 %v1057_v61, %v911_v63  ;;  %v789_v1 = vadd.f32 %v788_v62, %v708_v55  ;;  %v790_v2 = vpop.f32.mrb[7].mxu1 }
 0x311   : > { %v922_v3 = vmax.f32 %v920_v0, 0.0  ;;  %v912_v4 = vadd.f32 %v907_v56, %v789_v1 }
 0x313   : > { %924 = vst [vmem:[%s224_s15] sm:$0xff] %v922_v3  ;;  %v921_v5 = vadd.f32 %v1057_v61, %v912_v4 }
 0x315   : > { %v923_v7 = vmax.f32 %v921_v5, 0.0 }
 0x317   : > { %925 = vst [vmem:[%s224_s15 + $0x8] sm:$0xff] %v923_v7 }
 0x318 PF: > { %s15_s18 = sadd.s32 1, %s1309_s18  }
 0x319   : > { %p12_p4 = scmp.ge.s32.totalorder %s15_s18, 4  }
 0x31b   :  { %14 = sbr.rel (!%p12_p4) target bundleno = 1 (0x1), region = 74 }

</bundles_post_ra>
